<compile_context>
chip_gen: v7x
topology: tpu7x:2x2x1
jax: 0.10.0
libtpu: 0.0.40
codegen_flags: <defaults>
</compile_context>

<pallas_src>
import functools

import jax
import jax.numpy as jnp
from jax.experimental import pallas as pl
from jax.experimental.pallas import tpu as pltpu

EPS = 1e-6      # module EPS
BN_EPS = 1e-5   # torch.nn.BatchNorm default eps


def _choose_tile(pp, cap=2048):
    """Largest point-tile (multiple of 128) <= cap that divides the padded P."""
    if pp <= cap:
        return pp
    best = 128
    for cand in (256, 512, 1024, 2048, 4096, 8192):
        if cand <= cap and pp % cand == 0:
            best = cand
    return best


# ----------------------------------------------------------------------------
# Pass 1: per-tile partial sums of norm(Wx) and norm(Wx)^2 for batch statistics.
# ----------------------------------------------------------------------------
def _norm_stats_kernel(x_ref, w_ref, s1_ref, s2_ref, *, n_valid, tile_p):
    # x_ref: [1, 3, C_in, TP]   w_ref: [C_out, C_in]
    # s1_ref/s2_ref: [1, 1, C_out, 1] partial sums over this tile's valid points.
    w = w_ref[...]
    nsq = None
    for d in range(3):  # static loop over vector components, everything stays 2D
        yd = jnp.dot(w, x_ref[0, d], preferred_element_type=jnp.float32)
        nsq = yd * yd if nsq is None else nsq + yd * yd
    norm = jnp.sqrt(nsq + EPS)                                   # [C_out, TP]
    # mask zero-padded lanes so the batch statistics stay exact
    pos = pl.program_id(1) * tile_p + jax.lax.broadcasted_iota(
        jnp.int32, norm.shape, 1)
    norm = norm * (pos < n_valid).astype(jnp.float32)
    s1_ref[0, 0] = jnp.sum(norm, axis=1, keepdims=True)
    s2_ref[0, 0] = jnp.sum(norm * norm, axis=1, keepdims=True)


# ----------------------------------------------------------------------------
# Pass 2: fused  linear -> batchnorm(norm) rescale -> VN leaky relu.
# ----------------------------------------------------------------------------
def _vn_fused_kernel(x_ref, w_ref, u_ref, scale_ref, shift_ref, out_ref, *,
                     negative_slope):
    # x_ref: [1, 3, C_in, TP]  w: [C_out, C_in]  u: [C_out, C_out]
    # scale/shift: [C_out, 1]  out_ref: [1, 3, C_out, TP]
    w = w_ref[...]
    u = u_ref[...]
    sc = scale_ref[...]
    sh = shift_ref[...]

    y = []
    nsq = None
    for d in range(3):
        yd = jnp.dot(w, x_ref[0, d], preferred_element_type=jnp.float32)
        y.append(yd)
        nsq = yd * yd if nsq is None else nsq + yd * yd
    norm = jnp.sqrt(nsq + EPS)                                   # [C_out, TP]
    norm_bn = norm * sc + sh                                     # BN on the norm channel
    ratio = norm_bn / (norm + EPS)

    xb = [y[d] * ratio for d in range(3)]                        # batch-normed features
    dv = [jnp.dot(u, xb[d], preferred_element_type=jnp.float32) for d in range(3)]

    dot = xb[0] * dv[0] + xb[1] * dv[1] + xb[2] * dv[2]
    dnsq = dv[0] * dv[0] + dv[1] * dv[1] + dv[2] * dv[2]
    coef = dot / (dnsq + EPS)
    pos_mask = dot >= 0.0
    ns = negative_slope
    for d in range(3):
        flipped = xb[d] - coef * dv[d]
        kept = jnp.where(pos_mask, xb[d], flipped)
        out_ref[0, d] = ns * xb[d] + (1.0 - ns) * kept


# ----------------------------------------------------------------------------
# Wrapper: layout plumbing + the two pallas_calls.
# ----------------------------------------------------------------------------
def vn_simple_linear_and_leaky_relu(x, w_feat, w_dir, bn_gamma, bn_beta,
                                    negative_slope=0.2, tile_cap=2048):
    """x: [B, C_in, 3, *spatial] -> [B, C_out, 3, *spatial].

    Matches VNSimpleLinearAndLeakyReLU.forward with use_batchnorm='norm' in its
    default (training) state: batch statistics computed from the current batch.
    # TODO(synk): running-stat tracking / eval-mode BatchNorm is not modeled.
    """
    orig_dtype = x.dtype
    B, C_in = x.shape[0], x.shape[1]
    assert x.shape[2] == 3, "expected vector-neuron layout [B, C, 3, ...]"
    spatial = x.shape[3:]
    P = 1
    for s in spatial:
        P *= int(s)
    C_out = w_feat.shape[0]

    xf = x.astype(jnp.float32).reshape(B, C_in, 3, P)
    # lane-dense layout: points on the lane axis, vector component outermost
    xt = jnp.transpose(xf, (0, 2, 1, 3))                         # [B, 3, C_in, P]
    Pp = ((P + 127) // 128) * 128
    if Pp != P:
        xt = jnp.pad(xt, ((0, 0), (0, 0), (0, 0), (0, Pp - P)))
    TP = _choose_tile(Pp, tile_cap)
    grid = (B, Pp // TP)

    w_feat = w_feat.astype(jnp.float32)
    w_dir = w_dir.astype(jnp.float32)

    # ---- pass 1: batchnorm statistics of norm(Wx) --------------------------
    s1, s2 = pl.pallas_call(
        functools.partial(_norm_stats_kernel, n_valid=P, tile_p=TP),
        out_shape=(jax.ShapeDtypeStruct((B, grid[1], C_out, 1), jnp.float32),
                   jax.ShapeDtypeStruct((B, grid[1], C_out, 1), jnp.float32)),
        grid=grid,
        in_specs=[pl.BlockSpec((1, 3, C_in, TP), lambda b, t: (b, 0, 0, t)),
                  pl.BlockSpec((C_out, C_in), lambda b, t: (0, 0))],
        out_specs=(pl.BlockSpec((1, 1, C_out, 1), lambda b, t: (b, t, 0, 0)),
                   pl.BlockSpec((1, 1, C_out, 1), lambda b, t: (b, t, 0, 0))),
        compiler_params=pltpu.CompilerParams(
            dimension_semantics=("parallel", "parallel")),
    )(xt, w_feat)

    count = float(B * P)
    sum1 = jnp.sum(s1, axis=(0, 1, 3))                           # [C_out]
    sum2 = jnp.sum(s2, axis=(0, 1, 3))
    mean = sum1 / count
    var = jnp.maximum(sum2 / count - mean * mean, 0.0)           # biased (BN forward)
    scale = bn_gamma.astype(jnp.float32) / jnp.sqrt(var + BN_EPS)
    shift = bn_beta.astype(jnp.float32) - mean * scale
    scale = scale.reshape(C_out, 1)
    shift = shift.reshape(C_out, 1)

    # ---- pass 2: fused linear + batchnorm + VN leaky relu ------------------
    out = pl.pallas_call(
        functools.partial(_vn_fused_kernel, negative_slope=negative_slope),
        out_shape=jax.ShapeDtypeStruct((B, 3, C_out, Pp), jnp.float32),
        grid=grid,
        in_specs=[pl.BlockSpec((1, 3, C_in, TP), lambda b, t: (b, 0, 0, t)),
                  pl.BlockSpec((C_out, C_in), lambda b, t: (0, 0)),
                  pl.BlockSpec((C_out, C_out), lambda b, t: (0, 0)),
                  pl.BlockSpec((C_out, 1), lambda b, t: (0, 0)),
                  pl.BlockSpec((C_out, 1), lambda b, t: (0, 0))],
        out_specs=pl.BlockSpec((1, 3, C_out, TP), lambda b, t: (b, 0, 0, t)),
        compiler_params=pltpu.CompilerParams(
            dimension_semantics=("parallel", "parallel")),
    )(xt, w_feat, w_dir, scale, shift)

    out = out[:, :, :, :P]                                       # drop lane padding
    out = jnp.transpose(out, (0, 2, 1, 3))                       # [B, C_out, 3, P]
    return out.reshape((B, C_out, 3) + spatial).astype(orig_dtype)


# ----------------------------------------------------------------------------
# Pure-JAX reference mirroring the PyTorch forward (verification only).
# ----------------------------------------------------------------------------
def _reference(x, w_feat, w_dir, gamma, beta, negative_slope=0.2):
    x = x.astype(jnp.float32)
    y = jnp.einsum('oi,bidnm->bodnm', w_feat, x)
    norm = jnp.sqrt(jnp.sum(y * y, axis=2) + EPS)                # [B, C_out, N, M]
    mean = jnp.mean(norm, axis=(0, 2, 3), keepdims=True)
    var = jnp.mean((norm - mean) ** 2, axis=(0, 2, 3), keepdims=True)
    g = gamma.reshape(1, -1, 1, 1)
    b = beta.reshape(1, -1, 1, 1)
    norm_bn = (norm - mean) / jnp.sqrt(var + BN_EPS) * g + b
    xb = y / (norm[:, :, None] + EPS) * norm_bn[:, :, None]
    d = jnp.einsum('oc,bcdnm->bodnm', w_dir, xb)
    dot = jnp.sum(xb * d, axis=2, keepdims=True)
    mask = (dot >= 0).astype(jnp.float32)
    dnsq = jnp.sum(d * d, axis=2, keepdims=True)
    ns = negative_slope
    return ns * xb + (1 - ns) * (mask * xb +
                                 (1 - mask) * (xb - dot / (dnsq + EPS) * d))


if __name__ == "__main__":
    # dim=5 VN feature map: [B, C_in, 3, N_samples, M_neighbors]
    B, C_in, C_out, N, M = 2, 4, 8, 16, 8
    key = jax.random.PRNGKey(0)
    kx, kw, ku = jax.random.split(key, 3)
    x = jax.random.normal(kx, (B, C_in, 3, N, M), dtype=jnp.float32)
    w_feat = jax.random.normal(kw, (C_out, C_in), dtype=jnp.float32) / jnp.sqrt(C_in)
    w_dir = jax.random.normal(ku, (C_out, C_out), dtype=jnp.float32) / jnp.sqrt(C_out)
    gamma = jnp.ones((C_out,), jnp.float32)    # fresh BatchNorm affine init
    beta = jnp.zeros((C_out,), jnp.float32)

    fwd = jax.jit(functools.partial(vn_simple_linear_and_leaky_relu,
                                    negative_slope=0.2))
    out = jax.block_until_ready(fwd(x, w_feat, w_dir, gamma, beta))
    assert out.shape == (B, C_out, 3, N, M), out.shape

    ref = jax.block_until_ready(_reference(x, w_feat, w_dir, gamma, beta))
    err = float(jnp.max(jnp.abs(out - ref)))
    assert jnp.allclose(out, ref, atol=1e-4, rtol=1e-4), err

    print("KERNEL_OK")
</pallas_src>

<mosaic_0001>
module attributes {stable_mosaic.version = 11 : i64} {
  func.func @_norm_stats_kernel(%arg0: i32, %arg1: i32, %arg2: memref<1x3x4x128xf32, #tpu.memory_space<vmem>>, %arg3: memref<8x4xf32, #tpu.memory_space<vmem>>, %arg4: memref<1x1x8x1xf32, #tpu.memory_space<vmem>>, %arg5: memref<1x1x8x1xf32, #tpu.memory_space<vmem>>) attributes {dimension_semantics = [#tpu.dimension_semantics<parallel>, #tpu.dimension_semantics<parallel>], iteration_bounds = array<i64: 2, 1>, scalar_prefetch = 0 : i64, scratch_operands = 0 : i64, tpu.core_type = #tpu.core_type<tc>, window_params = [{transform_indices = @transform_0, window_bounds = array<i64: 1, 3, 4, 128>}, {pipeline_mode = #tpu.pipeline_mode<synchronous>, transform_indices = @transform_1, window_bounds = array<i64: 8, 4>}, {transform_indices = @transform_2, window_bounds = array<i64: 1, 1, 8, 1>}, {transform_indices = @transform_3, window_bounds = array<i64: 1, 1, 8, 1>}]} {
    %c0 = arith.constant 0 : index
    %c0_0 = arith.constant 0 : index
    %0 = vector.load %arg3[%c0, %c0_0] : memref<8x4xf32, #tpu.memory_space<vmem>>, vector<8x4xf32>
    %c0_1 = arith.constant 0 : index
    %c0_2 = arith.constant 0 : index
    %c0_3 = arith.constant 0 : index
    %c0_4 = arith.constant 0 : index
    %1 = vector.load %arg2[%c0_1, %c0_2, %c0_3, %c0_4] : memref<1x3x4x128xf32, #tpu.memory_space<vmem>>, vector<1x1x4x128xf32>
    %2 = vector.shape_cast %1 : vector<1x1x4x128xf32> to vector<4x128xf32>
    %cst = arith.constant dense<0.000000e+00> : vector<8x128xf32>
    %3 = tpu.matmul %0, %2, %cst {dimension_numbers = #tpu.dot_dimension_numbers<[1], [0], [0], [1], [0, 0, 1, 1], [], []>} : vector<8x4xf32>, vector<4x128xf32>, vector<8x128xf32> -> vector<8x128xf32>
    %4 = arith.mulf %3, %3 : vector<8x128xf32>
    %c0_5 = arith.constant 0 : index
    %c1 = arith.constant 1 : index
    %c0_6 = arith.constant 0 : index
    %c0_7 = arith.constant 0 : index
    %5 = vector.load %arg2[%c0_5, %c1, %c0_6, %c0_7] : memref<1x3x4x128xf32, #tpu.memory_space<vmem>>, vector<1x1x4x128xf32>
    %6 = vector.shape_cast %5 : vector<1x1x4x128xf32> to vector<4x128xf32>
    %cst_8 = arith.constant dense<0.000000e+00> : vector<8x128xf32>
    %7 = tpu.matmul %0, %6, %cst_8 {dimension_numbers = #tpu.dot_dimension_numbers<[1], [0], [0], [1], [0, 0, 1, 1], [], []>} : vector<8x4xf32>, vector<4x128xf32>, vector<8x128xf32> -> vector<8x128xf32>
    %8 = arith.mulf %7, %7 : vector<8x128xf32>
    %9 = arith.addf %4, %8 : vector<8x128xf32>
    %c0_9 = arith.constant 0 : index
    %c2 = arith.constant 2 : index
    %c0_10 = arith.constant 0 : index
    %c0_11 = arith.constant 0 : index
    %10 = vector.load %arg2[%c0_9, %c2, %c0_10, %c0_11] : memref<1x3x4x128xf32, #tpu.memory_space<vmem>>, vector<1x1x4x128xf32>
    %11 = vector.shape_cast %10 : vector<1x1x4x128xf32> to vector<4x128xf32>
    %cst_12 = arith.constant dense<0.000000e+00> : vector<8x128xf32>
    %12 = tpu.matmul %0, %11, %cst_12 {dimension_numbers = #tpu.dot_dimension_numbers<[1], [0], [0], [1], [0, 0, 1, 1], [], []>} : vector<8x4xf32>, vector<4x128xf32>, vector<8x128xf32> -> vector<8x128xf32>
    %13 = arith.mulf %12, %12 : vector<8x128xf32>
    %14 = arith.addf %9, %13 : vector<8x128xf32>
    %cst_13 = arith.constant 9.99999997E-7 : f32
    %15 = vector.broadcast %cst_13 : f32 to vector<8x128xf32>
    %16 = arith.addf %14, %15 : vector<8x128xf32>
    %17 = math.sqrt %16 : vector<8x128xf32>
    %c128_i32 = arith.constant 128 : i32
    %18 = arith.muli %arg1, %c128_i32 : i32
    %19 = tpu.iota {dimensions = array<i32: 1>} : vector<8x128xi32>
    %20 = vector.broadcast %18 : i32 to vector<8x128xi32>
    %21 = arith.addi %20, %19 : vector<8x128xi32>
    %c128_i32_14 = arith.constant 128 : i32
    %22 = vector.broadcast %c128_i32_14 : i32 to vector<8x128xi32>
    %23 = arith.cmpi slt, %21, %22 : vector<8x128xi32>
    %24 = arith.extui %23 : vector<8x128xi1> to vector<8x128xi32>
    %25 = arith.sitofp %24 : vector<8x128xi32> to vector<8x128xf32>
    %26 = arith.mulf %17, %25 : vector<8x128xf32>
    %cst_15 = arith.constant dense<0.000000e+00> : vector<8xf32>
    %27 = vector.multi_reduction <add>, %26, %cst_15 [1] : vector<8x128xf32> to vector<8xf32>
    %28 = vector.shape_cast %27 : vector<8xf32> to vector<8x1xf32>
    %c0_16 = arith.constant 0 : index
    %c0_17 = arith.constant 0 : index
    %c0_18 = arith.constant 0 : index
    %c0_19 = arith.constant 0 : index
    %29 = vector.load %arg4[%c0_16, %c0_17, %c0_18, %c0_19] : memref<1x1x8x1xf32, #tpu.memory_space<vmem>>, vector<1x1x8x1xf32>
    %30 = vector.shape_cast %29 : vector<1x1x8x1xf32> to vector<8x1xf32>
    %31 = vector.shape_cast %28 : vector<8x1xf32> to vector<1x1x8x1xf32>
    tpu.vector_store %arg4[%c0_16, %c0_17, %c0_18, %c0_19], %31 {strides = array<i32>} : memref<1x1x8x1xf32, #tpu.memory_space<vmem>>, vector<1x1x8x1xf32>,
    %32 = arith.mulf %26, %26 : vector<8x128xf32>
    %cst_20 = arith.constant dense<0.000000e+00> : vector<8xf32>
    %33 = vector.multi_reduction <add>, %32, %cst_20 [1] : vector<8x128xf32> to vector<8xf32>
    %34 = vector.shape_cast %33 : vector<8xf32> to vector<8x1xf32>
    %c0_21 = arith.constant 0 : index
    %c0_22 = arith.constant 0 : index
    %c0_23 = arith.constant 0 : index
    %c0_24 = arith.constant 0 : index
    %35 = vector.load %arg5[%c0_21, %c0_22, %c0_23, %c0_24] : memref<1x1x8x1xf32, #tpu.memory_space<vmem>>, vector<1x1x8x1xf32>
    %36 = vector.shape_cast %35 : vector<1x1x8x1xf32> to vector<8x1xf32>
    %37 = vector.shape_cast %34 : vector<8x1xf32> to vector<1x1x8x1xf32>
    tpu.vector_store %arg5[%c0_21, %c0_22, %c0_23, %c0_24], %37 {strides = array<i32>} : memref<1x1x8x1xf32, #tpu.memory_space<vmem>>, vector<1x1x8x1xf32>,
    return
  }
  func.func @transform_0(%arg0: i32, %arg1: i32) -> (i32, i32, i32, i32) {
    %c0_i32 = arith.constant 0 : i32
    %c0_i32_0 = arith.constant 0 : i32
    %c0_i32_1 = arith.constant 0 : i32
    return %arg0, %c0_i32, %c0_i32_0, %arg1 : i32, i32, i32, i32
  }
  func.func @transform_1(%arg0: i32, %arg1: i32) -> (i32, i32) {
    %c0_i32 = arith.constant 0 : i32
    %c0_i32_0 = arith.constant 0 : i32
    %c0_i32_1 = arith.constant 0 : i32
    return %c0_i32, %c0_i32_0 : i32, i32
  }
  func.func @transform_2(%arg0: i32, %arg1: i32) -> (i32, i32, i32, i32) {
    %c0_i32 = arith.constant 0 : i32
    %c0_i32_0 = arith.constant 0 : i32
    %c0_i32_1 = arith.constant 0 : i32
    return %arg0, %arg1, %c0_i32, %c0_i32_0 : i32, i32, i32, i32
  }
  func.func @transform_3(%arg0: i32, %arg1: i32) -> (i32, i32, i32, i32) {
    %c0_i32 = arith.constant 0 : i32
    %c0_i32_0 = arith.constant 0 : i32
    %c0_i32_1 = arith.constant 0 : i32
    return %arg0, %arg1, %c0_i32, %c0_i32_0 : i32, i32, i32, i32
  }
}

module attributes {stable_mosaic.version = 11 : i64} {
  func.func @_vn_fused_kernel(%arg0: i32, %arg1: i32, %arg2: memref<1x3x4x128xf32, #tpu.memory_space<vmem>>, %arg3: memref<8x4xf32, #tpu.memory_space<vmem>>, %arg4: memref<8x8xf32, #tpu.memory_space<vmem>>, %arg5: memref<8x1xf32, #tpu.memory_space<vmem>>, %arg6: memref<8x1xf32, #tpu.memory_space<vmem>>, %arg7: memref<1x3x8x128xf32, #tpu.memory_space<vmem>>) attributes {dimension_semantics = [#tpu.dimension_semantics<parallel>, #tpu.dimension_semantics<parallel>], iteration_bounds = array<i64: 2, 1>, scalar_prefetch = 0 : i64, scratch_operands = 0 : i64, tpu.core_type = #tpu.core_type<tc>, window_params = [{transform_indices = @transform_0, window_bounds = array<i64: 1, 3, 4, 128>}, {pipeline_mode = #tpu.pipeline_mode<synchronous>, transform_indices = @transform_1, window_bounds = array<i64: 8, 4>}, {pipeline_mode = #tpu.pipeline_mode<synchronous>, transform_indices = @transform_2, window_bounds = array<i64: 8, 8>}, {pipeline_mode = #tpu.pipeline_mode<synchronous>, transform_indices = @transform_3, window_bounds = array<i64: 8, 1>}, {pipeline_mode = #tpu.pipeline_mode<synchronous>, transform_indices = @transform_4, window_bounds = array<i64: 8, 1>}, {transform_indices = @transform_5, window_bounds = array<i64: 1, 3, 8, 128>}]} {
    %c0 = arith.constant 0 : index
    %c0_0 = arith.constant 0 : index
    %0 = vector.load %arg3[%c0, %c0_0] : memref<8x4xf32, #tpu.memory_space<vmem>>, vector<8x4xf32>
    %c0_1 = arith.constant 0 : index
    %c0_2 = arith.constant 0 : index
    %1 = vector.load %arg4[%c0_1, %c0_2] : memref<8x8xf32, #tpu.memory_space<vmem>>, vector<8x8xf32>
    %c0_3 = arith.constant 0 : index
    %c0_4 = arith.constant 0 : index
    %2 = vector.load %arg5[%c0_3, %c0_4] : memref<8x1xf32, #tpu.memory_space<vmem>>, vector<8x1xf32>
    %c0_5 = arith.constant 0 : index
    %c0_6 = arith.constant 0 : index
    %3 = vector.load %arg6[%c0_5, %c0_6] : memref<8x1xf32, #tpu.memory_space<vmem>>, vector<8x1xf32>
    %c0_7 = arith.constant 0 : index
    %c0_8 = arith.constant 0 : index
    %c0_9 = arith.constant 0 : index
    %c0_10 = arith.constant 0 : index
    %4 = vector.load %arg2[%c0_7, %c0_8, %c0_9, %c0_10] : memref<1x3x4x128xf32, #tpu.memory_space<vmem>>, vector<1x1x4x128xf32>
    %5 = vector.shape_cast %4 : vector<1x1x4x128xf32> to vector<4x128xf32>
    %cst = arith.constant dense<0.000000e+00> : vector<8x128xf32>
    %6 = tpu.matmul %0, %5, %cst {dimension_numbers = #tpu.dot_dimension_numbers<[1], [0], [0], [1], [0, 0, 1, 1], [], []>} : vector<8x4xf32>, vector<4x128xf32>, vector<8x128xf32> -> vector<8x128xf32>
    %7 = arith.mulf %6, %6 : vector<8x128xf32>
    %c0_11 = arith.constant 0 : index
    %c1 = arith.constant 1 : index
    %c0_12 = arith.constant 0 : index
    %c0_13 = arith.constant 0 : index
    %8 = vector.load %arg2[%c0_11, %c1, %c0_12, %c0_13] : memref<1x3x4x128xf32, #tpu.memory_space<vmem>>, vector<1x1x4x128xf32>
    %9 = vector.shape_cast %8 : vector<1x1x4x128xf32> to vector<4x128xf32>
    %cst_14 = arith.constant dense<0.000000e+00> : vector<8x128xf32>
    %10 = tpu.matmul %0, %9, %cst_14 {dimension_numbers = #tpu.dot_dimension_numbers<[1], [0], [0], [1], [0, 0, 1, 1], [], []>} : vector<8x4xf32>, vector<4x128xf32>, vector<8x128xf32> -> vector<8x128xf32>
    %11 = arith.mulf %10, %10 : vector<8x128xf32>
    %12 = arith.addf %7, %11 : vector<8x128xf32>
    %c0_15 = arith.constant 0 : index
    %c2 = arith.constant 2 : index
    %c0_16 = arith.constant 0 : index
    %c0_17 = arith.constant 0 : index
    %13 = vector.load %arg2[%c0_15, %c2, %c0_16, %c0_17] : memref<1x3x4x128xf32, #tpu.memory_space<vmem>>, vector<1x1x4x128xf32>
    %14 = vector.shape_cast %13 : vector<1x1x4x128xf32> to vector<4x128xf32>
    %cst_18 = arith.constant dense<0.000000e+00> : vector<8x128xf32>
    %15 = tpu.matmul %0, %14, %cst_18 {dimension_numbers = #tpu.dot_dimension_numbers<[1], [0], [0], [1], [0, 0, 1, 1], [], []>} : vector<8x4xf32>, vector<4x128xf32>, vector<8x128xf32> -> vector<8x128xf32>
    %16 = arith.mulf %15, %15 : vector<8x128xf32>
    %17 = arith.addf %12, %16 : vector<8x128xf32>
    %cst_19 = arith.constant 9.99999997E-7 : f32
    %18 = vector.broadcast %cst_19 : f32 to vector<8x128xf32>
    %19 = arith.addf %17, %18 : vector<8x128xf32>
    %20 = math.sqrt %19 : vector<8x128xf32>
    %21 = vector.broadcast %2 : vector<8x1xf32> to vector<8x128xf32>
    %22 = arith.mulf %20, %21 : vector<8x128xf32>
    %23 = vector.broadcast %3 : vector<8x1xf32> to vector<8x128xf32>
    %24 = arith.addf %22, %23 : vector<8x128xf32>
    %cst_20 = arith.constant 9.99999997E-7 : f32
    %25 = vector.broadcast %cst_20 : f32 to vector<8x128xf32>
    %26 = arith.addf %20, %25 : vector<8x128xf32>
    %27 = arith.divf %24, %26 : vector<8x128xf32>
    %28 = arith.mulf %6, %27 : vector<8x128xf32>
    %29 = arith.mulf %10, %27 : vector<8x128xf32>
    %30 = arith.mulf %15, %27 : vector<8x128xf32>
    %cst_21 = arith.constant dense<0.000000e+00> : vector<8x128xf32>
    %31 = tpu.matmul %1, %28, %cst_21 {dimension_numbers = #tpu.dot_dimension_numbers<[1], [0], [0], [1], [0, 0, 1, 1], [], []>} : vector<8x8xf32>, vector<8x128xf32>, vector<8x128xf32> -> vector<8x128xf32>
    %cst_22 = arith.constant dense<0.000000e+00> : vector<8x128xf32>
    %32 = tpu.matmul %1, %29, %cst_22 {dimension_numbers = #tpu.dot_dimension_numbers<[1], [0], [0], [1], [0, 0, 1, 1], [], []>} : vector<8x8xf32>, vector<8x128xf32>, vector<8x128xf32> -> vector<8x128xf32>
    %cst_23 = arith.constant dense<0.000000e+00> : vector<8x128xf32>
    %33 = tpu.matmul %1, %30, %cst_23 {dimension_numbers = #tpu.dot_dimension_numbers<[1], [0], [0], [1], [0, 0, 1, 1], [], []>} : vector<8x8xf32>, vector<8x128xf32>, vector<8x128xf32> -> vector<8x128xf32>
    %34 = arith.mulf %28, %31 : vector<8x128xf32>
    %35 = arith.mulf %29, %32 : vector<8x128xf32>
    %36 = arith.addf %34, %35 : vector<8x128xf32>
    %37 = arith.mulf %30, %33 : vector<8x128xf32>
    %38 = arith.addf %36, %37 : vector<8x128xf32>
    %39 = arith.mulf %31, %31 : vector<8x128xf32>
    %40 = arith.mulf %32, %32 : vector<8x128xf32>
    %41 = arith.addf %39, %40 : vector<8x128xf32>
    %42 = arith.mulf %33, %33 : vector<8x128xf32>
    %43 = arith.addf %41, %42 : vector<8x128xf32>
    %cst_24 = arith.constant 9.99999997E-7 : f32
    %44 = vector.broadcast %cst_24 : f32 to vector<8x128xf32>
    %45 = arith.addf %43, %44 : vector<8x128xf32>
    %46 = arith.divf %38, %45 : vector<8x128xf32>
    %cst_25 = arith.constant 0.000000e+00 : f32
    %47 = vector.broadcast %cst_25 : f32 to vector<8x128xf32>
    %48 = arith.cmpf oge, %38, %47 : vector<8x128xf32>
    %49 = arith.mulf %46, %31 : vector<8x128xf32>
    %50 = arith.subf %28, %49 : vector<8x128xf32>
    %51 = arith.select %48, %28, %50 : vector<8x128xi1>, vector<8x128xf32>
    %cst_26 = arith.constant 2.000000e-01 : f32
    %52 = vector.broadcast %cst_26 : f32 to vector<8x128xf32>
    %53 = arith.mulf %52, %28 : vector<8x128xf32>
    %cst_27 = arith.constant 8.000000e-01 : f32
    %54 = vector.broadcast %cst_27 : f32 to vector<8x128xf32>
    %55 = arith.mulf %54, %51 : vector<8x128xf32>
    %56 = arith.addf %53, %55 : vector<8x128xf32>
    %c0_28 = arith.constant 0 : index
    %c0_29 = arith.constant 0 : index
    %c0_30 = arith.constant 0 : index
    %c0_31 = arith.constant 0 : index
    %57 = vector.load %arg7[%c0_28, %c0_29, %c0_30, %c0_31] : memref<1x3x8x128xf32, #tpu.memory_space<vmem>>, vector<1x1x8x128xf32>
    %58 = vector.shape_cast %57 : vector<1x1x8x128xf32> to vector<8x128xf32>
    %59 = vector.shape_cast %56 : vector<8x128xf32> to vector<1x1x8x128xf32>
    tpu.vector_store %arg7[%c0_28, %c0_29, %c0_30, %c0_31], %59 {strides = array<i32>} : memref<1x3x8x128xf32, #tpu.memory_space<vmem>>, vector<1x1x8x128xf32>,
    %60 = arith.mulf %46, %32 : vector<8x128xf32>
    %61 = arith.subf %29, %60 : vector<8x128xf32>
    %62 = arith.select %48, %29, %61 : vector<8x128xi1>, vector<8x128xf32>
    %cst_32 = arith.constant 2.000000e-01 : f32
    %63 = vector.broadcast %cst_32 : f32 to vector<8x128xf32>
    %64 = arith.mulf %63, %29 : vector<8x128xf32>
    %cst_33 = arith.constant 8.000000e-01 : f32
    %65 = vector.broadcast %cst_33 : f32 to vector<8x128xf32>
    %66 = arith.mulf %65, %62 : vector<8x128xf32>
    %67 = arith.addf %64, %66 : vector<8x128xf32>
    %c0_34 = arith.constant 0 : index
    %c1_35 = arith.constant 1 : index
    %c0_36 = arith.constant 0 : index
    %c0_37 = arith.constant 0 : index
    %68 = vector.load %arg7[%c0_34, %c1_35, %c0_36, %c0_37] : memref<1x3x8x128xf32, #tpu.memory_space<vmem>>, vector<1x1x8x128xf32>
    %69 = vector.shape_cast %68 : vector<1x1x8x128xf32> to vector<8x128xf32>
    %70 = vector.shape_cast %67 : vector<8x128xf32> to vector<1x1x8x128xf32>
    tpu.vector_store %arg7[%c0_34, %c1_35, %c0_36, %c0_37], %70 {strides = array<i32>} : memref<1x3x8x128xf32, #tpu.memory_space<vmem>>, vector<1x1x8x128xf32>,
    %71 = arith.mulf %46, %33 : vector<8x128xf32>
    %72 = arith.subf %30, %71 : vector<8x128xf32>
    %73 = arith.select %48, %30, %72 : vector<8x128xi1>, vector<8x128xf32>
    %cst_38 = arith.constant 2.000000e-01 : f32
    %74 = vector.broadcast %cst_38 : f32 to vector<8x128xf32>
    %75 = arith.mulf %74, %30 : vector<8x128xf32>
    %cst_39 = arith.constant 8.000000e-01 : f32
    %76 = vector.broadcast %cst_39 : f32 to vector<8x128xf32>
    %77 = arith.mulf %76, %73 : vector<8x128xf32>
    %78 = arith.addf %75, %77 : vector<8x128xf32>
    %c0_40 = arith.constant 0 : index
    %c2_41 = arith.constant 2 : index
    %c0_42 = arith.constant 0 : index
    %c0_43 = arith.constant 0 : index
    %79 = vector.load %arg7[%c0_40, %c2_41, %c0_42, %c0_43] : memref<1x3x8x128xf32, #tpu.memory_space<vmem>>, vector<1x1x8x128xf32>
    %80 = vector.shape_cast %79 : vector<1x1x8x128xf32> to vector<8x128xf32>
    %81 = vector.shape_cast %78 : vector<8x128xf32> to vector<1x1x8x128xf32>
    tpu.vector_store %arg7[%c0_40, %c2_41, %c0_42, %c0_43], %81 {strides = array<i32>} : memref<1x3x8x128xf32, #tpu.memory_space<vmem>>, vector<1x1x8x128xf32>,
    return
  }
  func.func @transform_0(%arg0: i32, %arg1: i32) -> (i32, i32, i32, i32) {
    %c0_i32 = arith.constant 0 : i32
    %c0_i32_0 = arith.constant 0 : i32
    %c0_i32_1 = arith.constant 0 : i32
    return %arg0, %c0_i32, %c0_i32_0, %arg1 : i32, i32, i32, i32
  }
  func.func @transform_1(%arg0: i32, %arg1: i32) -> (i32, i32) {
    %c0_i32 = arith.constant 0 : i32
    %c0_i32_0 = arith.constant 0 : i32
    %c0_i32_1 = arith.constant 0 : i32
    return %c0_i32, %c0_i32_0 : i32, i32
  }
  func.func @transform_2(%arg0: i32, %arg1: i32) -> (i32, i32) {
    %c0_i32 = arith.constant 0 : i32
    %c0_i32_0 = arith.constant 0 : i32
    %c0_i32_1 = arith.constant 0 : i32
    return %c0_i32, %c0_i32_0 : i32, i32
  }
  func.func @transform_3(%arg0: i32, %arg1: i32) -> (i32, i32) {
    %c0_i32 = arith.constant 0 : i32
    %c0_i32_0 = arith.constant 0 : i32
    %c0_i32_1 = arith.constant 0 : i32
    return %c0_i32, %c0_i32_0 : i32, i32
  }
  func.func @transform_4(%arg0: i32, %arg1: i32) -> (i32, i32) {
    %c0_i32 = arith.constant 0 : i32
    %c0_i32_0 = arith.constant 0 : i32
    %c0_i32_1 = arith.constant 0 : i32
    return %c0_i32, %c0_i32_0 : i32, i32
  }
  func.func @transform_5(%arg0: i32, %arg1: i32) -> (i32, i32, i32, i32) {
    %c0_i32 = arith.constant 0 : i32
    %c0_i32_0 = arith.constant 0 : i32
    %c0_i32_1 = arith.constant 0 : i32
    return %arg0, %c0_i32, %c0_i32_0, %arg1 : i32, i32, i32, i32
  }
}

</mosaic_0001>

<bundles_post_ra>
// kernel: vn_simple_linear_and_leaky_relu.2
= control target key start
LH: loop header
LB: loop body
LE: loop exit
PB: predicated region body
PF: predicated region fallthrough
CT: control target
= control target key end

     0   :  { %s711_s12 = smov 0   ;;  %s713_s13 = smov 0   ;;  %s757_s0 = inlined_call_operand.vmem [shape: f32[2,3,4,128], index: 0, kind: input, shape index: {}]   ;;  %s758_s1 = inlined_call_operand.vmem [shape: f32[8,4], index: 1, kind: input, shape index: {}]   ;;  %s759_s2 = inlined_call_operand.vmem [shape: f32[2,1,8,1], index: 2, kind: output, shape index: {0}]   ;;  %s760_s3 = inlined_call_operand.vmem [shape: f32[2,1,8,1], index: 3, kind: output, shape index: {1}]  }
   0x1   :  { %s715_s14 = smov 0  }
   0x2 LB: > { %s26_s15 = sadd.s32 1, %s683_s13  ;;  %p601_p0 = scmp.ge.s32.totalorder %s687_s14, 1  ;;  %s687_s14 = sphi %s715_s14, %s14_s14   ;;  %s683_s13 = sphi %s713_s13, %s762_s13   ;;  %s679_s12 = sphi %s711_s12, %s761_s12  }
   0x3   : > { %p28_p1 = scmp.ge.s32.totalorder %s26_s15, 2  ;;  %p161_p2 = scmp.lt.s32.totalorder %s687_s14, 3 }
   0x5   : > { %s764_s15 = smov (%p28_p1, %s26_s15), 0  ;;  %p162_p3 = pnand %p601_p0, %p161_p2 }
   0x6   : > { %p197_p4 = scmp.lt.s32.totalorder (!%p162_p3), %s679_s12, 1  ;;  %v689_v0 = vmov (!%p162_p3), 0.0   ;;  %vm690_vm0 = vmmov (!%p162_p3), 0   ;;  %vm225_vm1 = vcmask (!%p162_p3), 1043456   ;;  %v219_v1 = vld [vmem:[%s758_s1] sm:$0xff] (!%p162_p3)  ;;  %vm221_vm2 = vcmask (!%p162_p3), 31744  }
   0x7   : > { %165 = sbr.rel (%p162_p3) target bundleno = 404 (0x194), region = 28  ;;  %621 = vmatprep.subr.mxu0 (!%p162_p3), %v689_v0  ;;  %623 = vmatprep.mubr.msk.f32.mxu0 (!%p162_p3), %vm690_vm0, %v689_v0  ;;  %vm473_vm5 = vcmask (!%p162_p3), 7168  }
   0x8   : > { %626 = vmatprep.subr.mxu1 (!%p162_p3), %v689_v0  ;;  %628 = vmatprep.mubr.msk.f32.mxu1 (!%p162_p3), %vm690_vm0, %v689_v0 }
   0xe   : > { %s766_s12 = smov (!%p197_p4, %s679_s12), 1 }
   0xf   : > { %s636_s16 = smul.u32 12, %s766_s12  ;;  %s603_s22 = sshll.u32 %s766_s12, 3 }
  0x10   : > { %s211_s25 = scalar_lea.vmem %s759_s2, %s603_s22  ;;  %s218_s28 = scalar_lea.vmem %s760_s3, %s603_s22 }
  0x11   : > { %s204_s19 = scalar_lea.vmem %s757_s0, %s636_s16 }
  0x12   : > { %v220_v2 = vld [vmem:[%s204_s19] sm:$0xf]  ;;  %v607_v3 = vld [vmem:[%s204_s19 + $0x4] sm:$0xf]  ;;  %v610_v4 = vld [vmem:[%s204_s19 + $0x8] sm:$0xf] }
  0x13   : > { %622 = vmatpush3.msk.msra.mxu0 %vm225_vm1, %v220_v2  ;;  %627 = vmatpush3.msk.msra.mxu1 %vm225_vm1, %v607_v3 }
  0x14   : > { %624 = vmatmul.mubr.msk.f32.vlgmr.msra.gmra.mrb[0].mxu0 %vm221_vm2, %v219_v1  ;;  %631 = vmatprep.subr.mxu0 %v689_v0 }
  0x15   : > { %629 = vmatmul.mubr.msk.f32.vlgmr.msra.gmra.mrb[0].mxu1 %vm221_vm2, %v219_v1  ;;  %632 = vmatpush3.msk.msra.mxu0 %vm225_vm1, %v610_v4 }
  0x16   : > { %633 = vmatprep.mubr.msk.f32.mxu0 %vm690_vm0, %v689_v0 }
  0x18   : > { %634 = vmatmul.mubr.msk.f32.vlgmr.msra.gmra.mrb[2].mxu0 %vm221_vm2, %v219_v1 }
  0xe7   : > { %v295_v5 = vpop.f32.mrb[0].mxu0 }
  0xe8   : > { %v299_v6 = vmul.f32 %v295_v5, %v295_v5  ;;  %v625_v7 = vpop.f32.mrb[1].mxu0  ;;  %v371_v8 = vpop.f32.mrb[0].mxu1 }
  0xe9   : > { %v375_v9 = vmul.f32 %v371_v8, %v371_v8  ;;  %v630_v10 = vpop.f32.mrb[1].mxu1 }
  0xeb   : > { %v376_v11 = vadd.f32 %v375_v9, %v299_v6  ;;  %v448_v12 = vpop.f32.mrb[2].mxu0 }
  0xec   : > { %v452_v13 = vmul.f32 %v448_v12, %v448_v12  ;;  %v635_v14 = vpop.f32.mrb[3].mxu0 }
  0xee   : > { %v453_v15 = vadd.f32 %v452_v13, %v376_v11 }
  0xf0   : > { %v454_v16 = vadd.f32 1e-06, %v453_v15 }
  0xf2   : > { %663 = vrsqrt.f32 %v454_v16  ;;  %vm457_vm3 = vcmp.eq.f32.partialorder %v454_v16, inf  ;;  %v460_v19 = vand.u32 2147483648, %v454_v16  ;;  %vm459_vm4 = vcmp.eq.f32.partialorder %v454_v16, 0.0 }
  0xfc   : > { %v664_v17 = vpop.eup %663 }
  0xfd   : > { %v456_v18 = vmul.f32 %v664_v17, %v454_v16 }
  0xff   : > { %v458_v20 = vsel %vm457_vm3, %v454_v16, %v456_v18 }
 0x100   : > { %v461_v21 = vsel %vm459_vm4, %v460_v19, %v458_v20 }
 0x101   : > { %471 = vadd.xlane.f32.xlu0 %v461_v21  ;;  %v475_v22 = vmul.f32 %v461_v21, %v461_v21 }
 0x105   : > { %476 = vadd.xlane.f32.xlu0 %v475_v22 }
 0x18e   : > { %v472_v23 = vpop.xlane.xlu0 %471 }
 0x18f   : > { %474 = vst.msk [vmem:[%s211_s25] sm:$0xff] %vm473_vm5, %v472_v23 }
 0x192   : > { %v477_v24 = vpop.xlane.xlu0 %476 }
 0x193   : > { %478 = vst.msk [vmem:[%s218_s28] sm:$0xff] %vm473_vm5, %v477_v24 }
 0x194 PF: > { %s14_s14 = sadd.s32 1, %s687_s14   ;;  %s761_s12 = smov %s683_s13 }
 0x195   : > { %p11_p5 = scmp.ge.s32.totalorder %s14_s14, 4   ;;  %s762_s13 = smov %s764_s15 }
 0x197   :  { %13 = sbr.rel (!%p11_p5) target bundleno = 2 (0x2), region = 72 }

// kernel: vn_simple_linear_and_leaky_relu.3
= control target key start
LH: loop header
LB: loop body
LE: loop exit
PB: predicated region body
PF: predicated region fallthrough
CT: control target
= control target key end

     0   :  { %s1011_s18 = smov 0   ;;  %s1013_s19 = smov 0   ;;  %s1078_s0 = inlined_call_operand.vmem [shape: f32[2,3,4,128], index: 0, kind: input, shape index: {}]   ;;  %s1079_s1 = inlined_call_operand.vmem [shape: f32[8,4], index: 1, kind: input, shape index: {}]   ;;  %s1080_s2 = inlined_call_operand.vmem [shape: f32[8,8], index: 2, kind: input, shape index: {}]   ;;  %s1081_s3 = inlined_call_operand.vmem [shape: f32[8,1], index: 3, kind: input, shape index: {}]   ;;  %s1082_s4 = inlined_call_operand.vmem [shape: f32[8,1], index: 4, kind: input, shape index: {}]   ;;  %s1083_s5 = inlined_call_operand.vmem [shape: f32[2,3,8,128], index: 5, kind: output, shape index: {}]  }
   0x1   :  { %s1015_s20 = smov 0  }
   0x2 LB: > { %s27_s21 = sadd.s32 1, %s972_s19  ;;  %p858_p0 = scmp.ge.s32.totalorder %s976_s20, 1  ;;  %s976_s20 = sphi %s1015_s20, %s15_s20   ;;  %s972_s19 = sphi %s1013_s19, %s1085_s19   ;;  %s968_s18 = sphi %s1011_s18, %s1084_s18  }
   0x3   : > { %p29_p1 = scmp.ge.s32.totalorder %s27_s21, 2  ;;  %p206_p2 = scmp.lt.s32.totalorder %s976_s20, 3 }
   0x5   : > { %s1087_s21 = smov (%p29_p1, %s27_s21), 0  ;;  %p207_p3 = pnand %p858_p0, %p206_p2 }
   0x6   : > { %p240_p4 = scmp.lt.s32.totalorder (!%p207_p3), %s968_s18, 1  ;;  %v978_v0 = vmov (!%p207_p3), 0.0   ;;  %v258_v1 = vld [vmem:[%s1081_s3] sm:$0xff] (!%p207_p3)  ;;  %vm979_vm0 = vmmov (!%p207_p3), 0   ;;  %v980_v2 = vmov (!%p207_p3), 0   ;;  %vm265_vm1 = vcmask (!%p207_p3), 1043456  }
   0x7   : > { %210 = sbr.rel (%p207_p3) target bundleno = 521 (0x209), region = 40  ;;  %888 = vmatprep.subr.mxu0 (!%p207_p3), %v978_v0  ;;  %893 = vmatprep.subr.mxu1 (!%p207_p3), %v978_v0  ;;  %v256_v3 = vld [vmem:[%s1079_s1] sm:$0xff] (!%p207_p3)  ;;  %vm261_vm2 = vcmask (!%p207_p3), 31744   ;;  %vm520_vm5 = vcmask (!%p207_p3), 64512  }
   0x8   : > { %890 = vmatprep.mubr.msk.f32.mxu0 (!%p207_p3), %vm979_vm0, %v978_v0  ;;  %895 = vmatprep.mubr.msk.f32.mxu1 (!%p207_p3), %vm979_vm0, %v978_v0  ;;  %v259_v7 = vld [vmem:[%s1082_s4] sm:$0xff] (!%p207_p3) }
   0x9   : > { %947 = vset.pattern.permute.xlu0 (!%p207_p3), %v980_v2  ;;  %v257_v35 = vld [vmem:[%s1080_s2] sm:$0xff] (!%p207_p3) }
   0xa   : > { %504 = vperm.xlu0 (!%p207_p3), %947, %v258_v1  }
   0xe   : > { %s1089_s18 = smov (!%p240_p4, %s968_s18), 1  ;;  %510 = vperm.xlu0 %947, %v259_v7  }
   0xf   : > { %s918_s24 = smul.u32 12, %s1089_s18 }
  0x10   : > { %s919_s9 = smul.u32 24, %s1089_s18 }
  0x11   : > { %s247_s27 = scalar_lea.vmem %s1078_s0, %s918_s24 }
  0x12   : > { %v260_v4 = vld [vmem:[%s247_s27] sm:$0xf]  ;;  %v863_v5 = vld [vmem:[%s247_s27 + $0x4] sm:$0xf]  ;;  %v866_v6 = vld [vmem:[%s247_s27 + $0x8] sm:$0xf]  ;;  %s255_s12 = scalar_lea.vmem %s1083_s5, %s919_s9 }
  0x13   : > { %889 = vmatpush3.msk.msra.mxu0 %vm265_vm1, %v260_v4  ;;  %894 = vmatpush3.msk.msra.mxu1 %vm265_vm1, %v863_v5 }
  0x14   : > { %891 = vmatmul.mubr.msk.f32.vlgmr.msra.gmra.mrb[0].mxu0 %vm261_vm2, %v256_v3  ;;  %896 = vmatmul.mubr.msk.f32.vlgmr.msra.gmra.mrb[0].mxu1 %vm261_vm2, %v256_v3 }
  0x15   : > { %898 = vmatprep.subr.mxu0 %v978_v0  ;;  %900 = vmatprep.mubr.msk.f32.mxu0 %vm979_vm0, %v978_v0 }
  0x16   : > { %899 = vmatpush3.msk.msra.mxu0 %vm265_vm1, %v866_v6  ;;  %903 = vmatprep.subr.mxu1 %v978_v0 }
  0x17   : > { %908 = vmatprep.subr.mxu0 %v978_v0  ;;  %905 = vmatprep.mubr.msk.f32.mxu1 %vm979_vm0, %v978_v0 }
  0x18   : > { %901 = vmatmul.mubr.msk.f32.vlgmr.msra.gmra.mrb[2].mxu0 %vm261_vm2, %v256_v3 }
  0x19   : > { %910 = vmatprep.mubr.msk.f32.mxu0 %vm979_vm0, %v978_v0 }
  0x89   : > { %v505_v26 = vpop.permute.xlu0 %504 }
  0x8d   : > { %v511_v28 = vpop.permute.xlu0 %510 }
  0xe7   : > { %v335_v8 = vpop.f32.mrb[0].mxu0  ;;  %v411_v9 = vpop.f32.mrb[0].mxu1 }
  0xe8   : > { %v339_v10 = vmul.f32 %v335_v8, %v335_v8  ;;  %v415_v11 = vmul.f32 %v411_v9, %v411_v9  ;;  %v892_v12 = vpop.f32.mrb[1].mxu0  ;;  %v897_v13 = vpop.f32.mrb[1].mxu1 }
  0xea   : > { %v416_v14 = vadd.f32 %v415_v11, %v339_v10 }
  0xeb   : > { %v488_v15 = vpop.f32.mrb[2].mxu0 }
  0xec   : > { %v492_v16 = vmul.f32 %v488_v15, %v488_v15  ;;  %v902_v17 = vpop.f32.mrb[3].mxu0 }
  0xee   : > { %v493_v18 = vadd.f32 %v492_v16, %v416_v14 }
  0xf0   : > { %v494_v19 = vadd.f32 1e-06, %v493_v18 }
  0xf2   : > { %948 = vrsqrt.f32 %v494_v19  ;;  %vm497_vm3 = vcmp.eq.f32.partialorder %v494_v19, inf  ;;  %v500_v22 = vand.u32 2147483648, %v494_v19  ;;  %vm499_vm4 = vcmp.eq.f32.partialorder %v494_v19, 0.0 }
  0xfc   : > { %v949_v20 = vpop.eup %948 }
  0xfd   : > { %v496_v21 = vmul.f32 %v949_v20, %v494_v19 }
  0xff   : > { %v498_v23 = vsel %vm497_vm3, %v494_v19, %v496_v21 }
 0x100   : > { %v501_v24 = vsel %vm499_vm4, %v500_v22, %v498_v23 }
 0x101   : > { %v514_v25 = vadd.f32 1e-06, %v501_v24  ;;  %v507_v27 = vmul.f32 %v505_v26, %v501_v24 }
 0x103   : > { %950 = vrcp.f32 %v514_v25  ;;  %v513_v29 = vadd.f32 %v511_v28, %v507_v27 }
 0x10d   : > { %v951_v30 = vpop.eup %950 }
 0x10e   : > { %v516_v31 = vmul.f32 %v951_v30, %v513_v29 }
 0x110   : > { %v517_v32 = vmul.f32 %v516_v31, %v335_v8  ;;  %v518_v33 = vmul.f32 %v516_v31, %v411_v9  ;;  %v519_v34 = vmul.f32 %v516_v31, %v488_v15 }
 0x112   : > { %904 = vmatpush3.msra.mxu1 %v517_v32  ;;  %909 = vmatpush3.msra.mxu0 %v518_v33  ;;  %v751_v61 = vmul.f32 0.2, %v517_v32  ;;  %v758_v62 = vmul.f32 0.2, %v518_v33  ;;  %v766_v2 = vmul.f32 0.2, %v519_v34 }
 0x113   : > { %906 = vmatmul.mubr.msk.f32.vlgmr.msra.gmra.mrb[2].mxu1 %vm520_vm5, %v257_v35  ;;  %911 = vmatmul.mubr.msk.f32.vlgmr.msra.gmra.mrb[4].mxu0 %vm520_vm5, %v257_v35 }
 0x114   : > { %913 = vmatprep.subr.mxu1 %v978_v0  ;;  %915 = vmatprep.mubr.msk.f32.mxu1 %vm979_vm0, %v978_v0 }
 0x115   : > { %914 = vmatpush3.msra.mxu1 %v519_v34 }
 0x117   : > { %916 = vmatmul.mubr.msk.f32.vlgmr.msra.gmra.mrb[4].mxu1 %vm520_vm5, %v257_v35 }
 0x1e6   : > { %v590_v36 = vpop.f32.mrb[2].mxu1  ;;  %v660_v37 = vpop.f32.mrb[4].mxu0 }
 0x1e7   : > { %v734_v38 = vmul.f32 %v590_v36, %v517_v32  ;;  %v739_v39 = vmul.f32 %v590_v36, %v590_v36  ;;  %v735_v40 = vmul.f32 %v660_v37, %v518_v33  ;;  %v740_v41 = vmul.f32 %v660_v37, %v660_v37  ;;  %v907_v42 = vpop.f32.mrb[3].mxu1  ;;  %v912_v43 = vpop.f32.mrb[5].mxu0 }
 0x1e9   : > { %v736_v44 = vadd.f32 %v735_v40, %v734_v38  ;;  %v741_v45 = vadd.f32 %v740_v41, %v739_v39 }
 0x1ea   : > { %v730_v46 = vpop.f32.mrb[4].mxu1 }
 0x1eb   : > { %v737_v47 = vmul.f32 %v730_v46, %v519_v34  ;;  %v742_v48 = vmul.f32 %v730_v46, %v730_v46  ;;  %v917_v49 = vpop.f32.mrb[5].mxu1 }
 0x1ed   : > { %v738_v50 = vadd.f32 %v737_v47, %v736_v44  ;;  %v743_v51 = vadd.f32 %v742_v48, %v741_v45 }
 0x1ef   : > { %v744_v52 = vadd.f32 1e-06, %v743_v51  ;;  %vm747_vm6 = vcmp.ge.f32.partialorder %v738_v50, 0.0 }
 0x1f1   : > { %952 = vrcp.f32 %v744_v52 }
 0x1fb   : > { %v953_v53 = vpop.eup %952 }
 0x1fc   : > { %v746_v54 = vmul.f32 %v953_v53, %v738_v50 }
 0x1fe   : > { %v748_v55 = vmul.f32 %v746_v54, %v590_v36  ;;  %v755_v56 = vmul.f32 %v746_v54, %v660_v37  ;;  %v763_v57 = vmul.f32 %v746_v54, %v730_v46 }
 0x200   : > { %v749_v58 = vsub.f32 %v517_v32, %v748_v55  ;;  %v756_v59 = vsub.f32 %v518_v33, %v755_v56  ;;  %v764_v60 = vsub.f32 %v519_v34, %v763_v57 }
 0x202   : > { %v750_v63 = vsel %vm747_vm6, %v517_v32, %v749_v58  ;;  %v757_v0 = vsel %vm747_vm6, %v518_v33, %v756_v59  ;;  %v765_v1 = vsel %vm747_vm6, %v519_v34, %v764_v60 }
 0x203   : > { %v752_v3 = vmul.f32 0.8, %v750_v63  ;;  %v759_v4 = vmul.f32 0.8, %v757_v0  ;;  %v767_v5 = vmul.f32 0.8, %v765_v1 }
 0x205   : > { %v753_v6 = vadd.f32 %v752_v3, %v751_v61  ;;  %v760_v7 = vadd.f32 %v759_v4, %v758_v62  ;;  %v768_v8 = vadd.f32 %v767_v5, %v766_v2 }
 0x207   : > { %754 = vst [vmem:[%s255_s12] sm:$0xff] %v753_v6  ;;  %872 = vst [vmem:[%s255_s12 + $0x8] sm:$0xff] %v760_v7 }
 0x208   : > { %873 = vst [vmem:[%s255_s12 + $0x10] sm:$0xff] %v768_v8 }
 0x209 PF: > { %s15_s20 = sadd.s32 1, %s976_s20   ;;  %s1084_s18 = smov %s972_s19 }
 0x20a   : > { %p12_p5 = scmp.ge.s32.totalorder %s15_s20, 4   ;;  %s1085_s19 = smov %s1087_s21 }
 0x20c   :  { %14 = sbr.rel (!%p12_p5) target bundleno = 2 (0x2), region = 74 }

</bundles_post_ra>
